<compile_context>
chip_gen: v6e
topology: v6e:2x2x1
jax: 0.10.0
libtpu: 0.0.40
codegen_flags: <defaults>
</compile_context>

<pallas_src>
import functools

import jax
import jax.numpy as jnp
from jax.experimental import pallas as pl
from jax.experimental.pallas import tpu as pltpu


def _round_up(n, m):
    return ((n + m - 1) // m) * m


def _embedding_block_kernel(atom_ref, inp_ref,
                            w1_ref, b1_ref,      # weighting Linear(atom_embed_dim, B)
                            w2_ref, b2_ref,      # expert Linear(input_dim, D)
                            w3_ref, b3_ref,      # expert Linear(D, B*D), fc already folded in
                            b4_ref,              # fc bias (1, D)
                            out_ref,
                            *, B, D):
    f32 = jnp.float32

    # ---- weighting: Linear -> softmax(dim=-1) --------------------------------
    logits = jnp.dot(atom_ref[...], w1_ref[...],
                     preferred_element_type=f32) + b1_ref[...]              # (tm, B)
    m = jnp.max(logits, axis=-1, keepdims=True)
    e = jnp.exp(logits - m)
    # divide on the EUP (approx reciprocal); VALU slot stays free
    w = e * pl.reciprocal(jnp.sum(e, axis=-1, keepdims=True), approx=True)  # (tm, B)

    # ---- multiExpert: Linear -> ReLU -> Linear (final fc folded into w3) -----
    h = jnp.dot(inp_ref[...], w2_ref[...],
                preferred_element_type=f32) + b2_ref[...]                   # (tm, D)
    h = jnp.maximum(h, 0.0)
    v = jnp.dot(h.astype(w3_ref.dtype), w3_ref[...],
                preferred_element_type=f32) + b3_ref[...]                   # (tm, B*D)

    # ---- mixture = weight (tm,1,B) @ variations (tm,B,D) -> (tm, D) ----------
    # B is tiny: unrolled weighted sum of the D-wide expert lane slices.
    mix = w[:, 0:1] * v[:, 0:D]
    for b in range(1, B):
        mix = mix + w[:, b:b + 1] * v[:, b * D:(b + 1) * D]                 # (tm, D)

    # ---- fc: only the bias remains (the w4 matmul was folded into w3) --------
    out_ref[...] = (mix + b4_ref[...]).astype(out_ref.dtype)


def embedding_block(atom_embed, inp, params, *, B, output_dim,
                    tm=512, compute_dtype=jnp.bfloat16):
    """atom_embed: (..., atom_embed_dim), inp: (..., input_dim) -> (..., output_dim)."""
    w1, b1, w2, b2, w3, b3, w4, b4 = params
    lead = atom_embed.shape[:-1]
    A = atom_embed.shape[-1]
    I = inp.shape[-1]
    D = output_dim
    hp = jax.lax.Precision.HIGHEST

    assert w1.shape == (A, B) and w2.shape == (I, D)
    assert w3.shape == (D, B * D) and w4.shape == (D, D)

    # ---- fold the final fc into the expert projection (exact up to f32 rounding)
    #   out = (sum_b w_b * (h @ w3_b + b3_b)) @ w4 + b4
    #       =  sum_b w_b * (h @ (w3_b @ w4) + b3_b @ w4) + b4
    w3f = jnp.einsum('ibj,jk->ibk',
                     w3.reshape(D, B, D).astype(jnp.float32),
                     w4.astype(jnp.float32), precision=hp).reshape(D, B * D)
    b3f = jnp.matmul(b3.reshape(B, D).astype(jnp.float32),
                     w4.astype(jnp.float32), precision=hp).reshape(1, B * D)

    # ---- matmul operands in compute_dtype; biases / accumulation stay f32 ----
    atom2d = atom_embed.reshape(-1, A).astype(compute_dtype)
    inp2d = inp.reshape(-1, I).astype(compute_dtype)
    w1c = w1.astype(compute_dtype)
    w2c = w2.astype(compute_dtype)
    w3c = w3f.astype(compute_dtype)
    b1r = b1.reshape(1, -1).astype(jnp.float32)
    b2r = b2.reshape(1, -1).astype(jnp.float32)
    b3r = b3f.astype(jnp.float32)
    b4r = b4.reshape(1, -1).astype(jnp.float32)

    # ---- row tiling: large tiles, pad N so any leading shape works -----------
    N = atom2d.shape[0]
    tm_eff = _round_up(max(1, min(tm, N)), 8)
    n_tiles = int(pl.cdiv(N, tm_eff))
    n_pad = n_tiles * tm_eff
    if n_pad != N:
        atom2d = jnp.pad(atom2d, ((0, n_pad - N), (0, 0)))
        inp2d = jnp.pad(inp2d, ((0, n_pad - N), (0, 0)))

    full = lambda arr: pl.BlockSpec(arr.shape, lambda i: (0, 0))
    kernel = functools.partial(_embedding_block_kernel, B=B, D=D)

    out2d = pl.pallas_call(
        kernel,
        out_shape=jax.ShapeDtypeStruct((n_pad, D), jnp.float32),
        grid_spec=pltpu.PrefetchScalarGridSpec(
            num_scalar_prefetch=0,
            grid=(n_tiles,),
            in_specs=[
                pl.BlockSpec((tm_eff, A), lambda i: (i, 0)),   # atom_embed rows
                pl.BlockSpec((tm_eff, I), lambda i: (i, 0)),   # input rows
                full(w1c), full(b1r),
                full(w2c), full(b2r),
                full(w3c), full(b3r),
                full(b4r),
            ],
            out_specs=pl.BlockSpec((tm_eff, D), lambda i: (i, 0)),
        ),
        # "parallel" so multi-tile grids shard across both TensorCores on v7x.
        compiler_params=pltpu.CompilerParams(
            dimension_semantics=("parallel",)),
    )(atom2d, inp2d, w1c, b1r, w2c, b2r, w3c, b3r, b4r)

    return out2d[:N].reshape(*lead, D)


def init_params(key, atom_embed_dim, input_dim, B, output_dim):
    """Deterministic synthetic parameters. Linear weights stored as (in, out)."""
    ks = jax.random.split(key, 8)
    def lin(kw, kb, fan_in, fan_out):
        bound = 1.0 / jnp.sqrt(fan_in)
        w = jax.random.uniform(kw, (fan_in, fan_out), jnp.float32, -bound, bound)
        b = jax.random.uniform(kb, (fan_out,), jnp.float32, -bound, bound)
        return w, b
    w1, b1 = lin(ks[0], ks[1], atom_embed_dim, B)
    w2, b2 = lin(ks[2], ks[3], input_dim, output_dim)
    w3, b3 = lin(ks[4], ks[5], output_dim, B * output_dim)
    w4, b4 = lin(ks[6], ks[7], output_dim, output_dim)
    return (w1, b1, w2, b2, w3, b3, w4, b4)


def embedding_block_ref(atom_embed, inp, params, *, B, output_dim):
    """Pure-JAX reference mirroring the PyTorch forward (f32-accurate matmuls)."""
    w1, b1, w2, b2, w3, b3, w4, b4 = params
    hp = jax.lax.Precision.HIGHEST
    weight = jax.nn.softmax(jnp.matmul(atom_embed, w1, precision=hp) + b1,
                            axis=-1)[..., None, :]                           # (...,1,B)
    h = jax.nn.relu(jnp.matmul(inp, w2, precision=hp) + b2)
    variations = (jnp.matmul(h, w3, precision=hp) + b3
                  ).reshape(*inp.shape[:-1], B, output_dim)                  # (...,B,D)
    mixture = jnp.matmul(weight, variations, precision=hp)                   # (...,1,D)
    mixture = mixture.reshape(*inp.shape[:-1], output_dim)
    return jnp.matmul(mixture, w4, precision=hp) + b4


if __name__ == "__main__":
    atom_embed_dim, input_dim, B, output_dim = 16, 32, 4, 32

    key = jax.random.PRNGKey(0)
    k_ae, k_in, k_p, k_ae2, k_in2 = jax.random.split(key, 5)
    params = init_params(k_p, atom_embed_dim, input_dim, B, output_dim)

    # Tolerance is loose because matmul operands run in bf16 (f32 accumulate)
    # and the softmax divide uses the EUP approx reciprocal.
    TOL = 2e-2

    # --- small shape (single tile) --------------------------------------------
    lead = (2, 8)  # N = 16
    atom_embed = jax.random.normal(k_ae, (*lead, atom_embed_dim), jnp.float32)
    x = jax.random.normal(k_in, (*lead, input_dim), jnp.float32)
    ref = embedding_block_ref(atom_embed, x, params, B=B, output_dim=output_dim)

    out = jax.block_until_ready(
        embedding_block(atom_embed, x, params, B=B, output_dim=output_dim))
    assert out.shape == (*lead, output_dim)
    assert jnp.allclose(out, ref, atol=TOL, rtol=TOL), "bf16 kernel mismatch vs reference"

    out_f32 = jax.block_until_ready(
        embedding_block(atom_embed, x, params, B=B, output_dim=output_dim,
                        compute_dtype=jnp.float32))
    assert jnp.allclose(out_f32, ref, atol=TOL, rtol=TOL), "f32 kernel mismatch vs reference"

    # --- larger shape: exercises zero-padding + a multi-step (megacore) grid --
    lead2 = (3, 700)  # N = 2100 -> tm=512 -> grid=5, padded to 2560 rows
    atom_embed2 = jax.random.normal(k_ae2, (*lead2, atom_embed_dim), jnp.float32)
    x2 = jax.random.normal(k_in2, (*lead2, input_dim), jnp.float32)
    ref2 = embedding_block_ref(atom_embed2, x2, params, B=B, output_dim=output_dim)
    out2 = jax.block_until_ready(
        embedding_block(atom_embed2, x2, params, B=B, output_dim=output_dim, tm=512))
    assert out2.shape == (*lead2, output_dim)
    assert jnp.allclose(out2, ref2, atol=TOL, rtol=TOL), "multi-tile kernel mismatch vs reference"

    print("KERNEL_OK")
</pallas_src>

<mosaic_0001>
module attributes {stable_mosaic.version = 11 : i64} {
  func.func @_embedding_block_kernel(%arg0: i32, %arg1: memref<16x16xbf16, #tpu.memory_space<vmem>>, %arg2: memref<16x32xbf16, #tpu.memory_space<vmem>>, %arg3: memref<16x4xbf16, #tpu.memory_space<vmem>>, %arg4: memref<1x4xf32, #tpu.memory_space<vmem>>, %arg5: memref<32x32xbf16, #tpu.memory_space<vmem>>, %arg6: memref<1x32xf32, #tpu.memory_space<vmem>>, %arg7: memref<32x128xbf16, #tpu.memory_space<vmem>>, %arg8: memref<1x128xf32, #tpu.memory_space<vmem>>, %arg9: memref<1x32xf32, #tpu.memory_space<vmem>>, %arg10: memref<16x32xf32, #tpu.memory_space<vmem>>) attributes {dimension_semantics = [#tpu.dimension_semantics<parallel>], iteration_bounds = array<i64: 1>, scalar_prefetch = 0 : i64, scratch_operands = 0 : i64, tpu.core_type = #tpu.core_type<tc>, window_params = [{transform_indices = @transform_0, window_bounds = array<i64: 16, 16>}, {transform_indices = @transform_1, window_bounds = array<i64: 16, 32>}, {pipeline_mode = #tpu.pipeline_mode<synchronous>, transform_indices = @transform_2, window_bounds = array<i64: 16, 4>}, {pipeline_mode = #tpu.pipeline_mode<synchronous>, transform_indices = @transform_3, window_bounds = array<i64: 1, 4>}, {pipeline_mode = #tpu.pipeline_mode<synchronous>, transform_indices = @transform_4, window_bounds = array<i64: 32, 32>}, {pipeline_mode = #tpu.pipeline_mode<synchronous>, transform_indices = @transform_5, window_bounds = array<i64: 1, 32>}, {pipeline_mode = #tpu.pipeline_mode<synchronous>, transform_indices = @transform_6, window_bounds = array<i64: 32, 128>}, {pipeline_mode = #tpu.pipeline_mode<synchronous>, transform_indices = @transform_7, window_bounds = array<i64: 1, 128>}, {pipeline_mode = #tpu.pipeline_mode<synchronous>, transform_indices = @transform_8, window_bounds = array<i64: 1, 32>}, {transform_indices = @transform_9, window_bounds = array<i64: 16, 32>}]} {
    %c0 = arith.constant 0 : index
    %c0_0 = arith.constant 0 : index
    %0 = vector.load %arg1[%c0, %c0_0] : memref<16x16xbf16, #tpu.memory_space<vmem>>, vector<16x16xbf16>
    %c0_1 = arith.constant 0 : index
    %c0_2 = arith.constant 0 : index
    %1 = vector.load %arg3[%c0_1, %c0_2] : memref<16x4xbf16, #tpu.memory_space<vmem>>, vector<16x4xbf16>
    %cst = arith.constant dense<0.000000e+00> : vector<16x4xf32>
    %2 = tpu.matmul %0, %1, %cst {dimension_numbers = #tpu.dot_dimension_numbers<[1], [0], [0], [1], [0, 0, 1, 1], [], []>} : vector<16x16xbf16>, vector<16x4xbf16>, vector<16x4xf32> -> vector<16x4xf32>
    %c0_3 = arith.constant 0 : index
    %c0_4 = arith.constant 0 : index
    %3 = vector.load %arg4[%c0_3, %c0_4] : memref<1x4xf32, #tpu.memory_space<vmem>>, vector<1x4xf32>
    %4 = vector.broadcast %3 : vector<1x4xf32> to vector<16x4xf32>
    %5 = arith.addf %2, %4 : vector<16x4xf32>
    %cst_5 = arith.constant dense<0xFF800000> : vector<16xf32>
    %6 = vector.multi_reduction <maximumf>, %5, %cst_5 [1] : vector<16x4xf32> to vector<16xf32>
    %7 = vector.shape_cast %6 : vector<16xf32> to vector<16x1xf32>
    %8 = vector.broadcast %7 : vector<16x1xf32> to vector<16x4xf32>
    %9 = arith.subf %5, %8 : vector<16x4xf32>
    %10 = math.exp %9 : vector<16x4xf32>
    %cst_6 = arith.constant dense<0.000000e+00> : vector<16xf32>
    %11 = vector.multi_reduction <add>, %10, %cst_6 [1] : vector<16x4xf32> to vector<16xf32>
    %12 = vector.shape_cast %11 : vector<16xf32> to vector<16x1xf32>
    %13 = tpu.reciprocal %12 {approx = true} : vector<16x1xf32> -> vector<16x1xf32>
    %14 = vector.broadcast %13 : vector<16x1xf32> to vector<16x4xf32>
    %15 = arith.mulf %10, %14 : vector<16x4xf32>
    %c0_7 = arith.constant 0 : index
    %c0_8 = arith.constant 0 : index
    %16 = vector.load %arg2[%c0_7, %c0_8] : memref<16x32xbf16, #tpu.memory_space<vmem>>, vector<16x32xbf16>
    %c0_9 = arith.constant 0 : index
    %c0_10 = arith.constant 0 : index
    %17 = vector.load %arg5[%c0_9, %c0_10] : memref<32x32xbf16, #tpu.memory_space<vmem>>, vector<32x32xbf16>
    %cst_11 = arith.constant dense<0.000000e+00> : vector<16x32xf32>
    %18 = tpu.matmul %16, %17, %cst_11 {dimension_numbers = #tpu.dot_dimension_numbers<[1], [0], [0], [1], [0, 0, 1, 1], [], []>} : vector<16x32xbf16>, vector<32x32xbf16>, vector<16x32xf32> -> vector<16x32xf32>
    %c0_12 = arith.constant 0 : index
    %c0_13 = arith.constant 0 : index
    %19 = vector.load %arg6[%c0_12, %c0_13] : memref<1x32xf32, #tpu.memory_space<vmem>>, vector<1x32xf32>
    %20 = vector.broadcast %19 : vector<1x32xf32> to vector<16x32xf32>
    %21 = arith.addf %18, %20 : vector<16x32xf32>
    %cst_14 = arith.constant 0.000000e+00 : f32
    %22 = vector.broadcast %cst_14 : f32 to vector<16x32xf32>
    %23 = arith.maximumf %21, %22 : vector<16x32xf32>
    %24 = arith.truncf %23 : vector<16x32xf32> to vector<16x32xbf16>
    %c0_15 = arith.constant 0 : index
    %c0_16 = arith.constant 0 : index
    %25 = vector.load %arg7[%c0_15, %c0_16] : memref<32x128xbf16, #tpu.memory_space<vmem>>, vector<32x128xbf16>
    %cst_17 = arith.constant dense<0.000000e+00> : vector<16x128xf32>
    %26 = tpu.matmul %24, %25, %cst_17 {dimension_numbers = #tpu.dot_dimension_numbers<[1], [0], [0], [1], [0, 0, 1, 1], [], []>} : vector<16x32xbf16>, vector<32x128xbf16>, vector<16x128xf32> -> vector<16x128xf32>
    %c0_18 = arith.constant 0 : index
    %c0_19 = arith.constant 0 : index
    %27 = vector.load %arg8[%c0_18, %c0_19] : memref<1x128xf32, #tpu.memory_space<vmem>>, vector<1x128xf32>
    %28 = vector.broadcast %27 : vector<1x128xf32> to vector<16x128xf32>
    %29 = arith.addf %26, %28 : vector<16x128xf32>
    %30 = vector.extract_strided_slice %15 {offsets = [0, 0], sizes = [16, 1], strides = [1, 1]} : vector<16x4xf32> to vector<16x1xf32>
    %31 = vector.extract_strided_slice %29 {offsets = [0, 0], sizes = [16, 32], strides = [1, 1]} : vector<16x128xf32> to vector<16x32xf32>
    %32 = vector.broadcast %30 : vector<16x1xf32> to vector<16x32xf32>
    %33 = arith.mulf %32, %31 : vector<16x32xf32>
    %34 = vector.extract_strided_slice %15 {offsets = [0, 1], sizes = [16, 1], strides = [1, 1]} : vector<16x4xf32> to vector<16x1xf32>
    %35 = vector.extract_strided_slice %29 {offsets = [0, 32], sizes = [16, 32], strides = [1, 1]} : vector<16x128xf32> to vector<16x32xf32>
    %36 = vector.broadcast %34 : vector<16x1xf32> to vector<16x32xf32>
    %37 = arith.mulf %36, %35 : vector<16x32xf32>
    %38 = arith.addf %33, %37 : vector<16x32xf32>
    %39 = vector.extract_strided_slice %15 {offsets = [0, 2], sizes = [16, 1], strides = [1, 1]} : vector<16x4xf32> to vector<16x1xf32>
    %40 = vector.extract_strided_slice %29 {offsets = [0, 64], sizes = [16, 32], strides = [1, 1]} : vector<16x128xf32> to vector<16x32xf32>
    %41 = vector.broadcast %39 : vector<16x1xf32> to vector<16x32xf32>
    %42 = arith.mulf %41, %40 : vector<16x32xf32>
    %43 = arith.addf %38, %42 : vector<16x32xf32>
    %44 = vector.extract_strided_slice %15 {offsets = [0, 3], sizes = [16, 1], strides = [1, 1]} : vector<16x4xf32> to vector<16x1xf32>
    %45 = vector.extract_strided_slice %29 {offsets = [0, 96], sizes = [16, 32], strides = [1, 1]} : vector<16x128xf32> to vector<16x32xf32>
    %46 = vector.broadcast %44 : vector<16x1xf32> to vector<16x32xf32>
    %47 = arith.mulf %46, %45 : vector<16x32xf32>
    %48 = arith.addf %43, %47 : vector<16x32xf32>
    %c0_20 = arith.constant 0 : index
    %c0_21 = arith.constant 0 : index
    %49 = vector.load %arg9[%c0_20, %c0_21] : memref<1x32xf32, #tpu.memory_space<vmem>>, vector<1x32xf32>
    %50 = vector.broadcast %49 : vector<1x32xf32> to vector<16x32xf32>
    %51 = arith.addf %48, %50 : vector<16x32xf32>
    %c0_22 = arith.constant 0 : index
    %c0_23 = arith.constant 0 : index
    %52 = vector.load %arg10[%c0_22, %c0_23] : memref<16x32xf32, #tpu.memory_space<vmem>>, vector<16x32xf32>
    tpu.vector_store %arg10[%c0_22, %c0_23], %51 {strides = array<i32>} : memref<16x32xf32, #tpu.memory_space<vmem>>, vector<16x32xf32>,
    return
  }
  func.func @transform_0(%arg0: i32) -> (i32, i32) {
    %c0_i32 = arith.constant 0 : i32
    %c0_i32_0 = arith.constant 0 : i32
    return %arg0, %c0_i32 : i32, i32
  }
  func.func @transform_1(%arg0: i32) -> (i32, i32) {
    %c0_i32 = arith.constant 0 : i32
    %c0_i32_0 = arith.constant 0 : i32
    return %arg0, %c0_i32 : i32, i32
  }
  func.func @transform_2(%arg0: i32) -> (i32, i32) {
    %c0_i32 = arith.constant 0 : i32
    %c0_i32_0 = arith.constant 0 : i32
    %c0_i32_1 = arith.constant 0 : i32
    return %c0_i32, %c0_i32_0 : i32, i32
  }
  func.func @transform_3(%arg0: i32) -> (i32, i32) {
    %c0_i32 = arith.constant 0 : i32
    %c0_i32_0 = arith.constant 0 : i32
    %c0_i32_1 = arith.constant 0 : i32
    return %c0_i32, %c0_i32_0 : i32, i32
  }
  func.func @transform_4(%arg0: i32) -> (i32, i32) {
    %c0_i32 = arith.constant 0 : i32
    %c0_i32_0 = arith.constant 0 : i32
    %c0_i32_1 = arith.constant 0 : i32
    return %c0_i32, %c0_i32_0 : i32, i32
  }
  func.func @transform_5(%arg0: i32) -> (i32, i32) {
    %c0_i32 = arith.constant 0 : i32
    %c0_i32_0 = arith.constant 0 : i32
    %c0_i32_1 = arith.constant 0 : i32
    return %c0_i32, %c0_i32_0 : i32, i32
  }
  func.func @transform_6(%arg0: i32) -> (i32, i32) {
    %c0_i32 = arith.constant 0 : i32
    %c0_i32_0 = arith.constant 0 : i32
    %c0_i32_1 = arith.constant 0 : i32
    return %c0_i32, %c0_i32_0 : i32, i32
  }
  func.func @transform_7(%arg0: i32) -> (i32, i32) {
    %c0_i32 = arith.constant 0 : i32
    %c0_i32_0 = arith.constant 0 : i32
    %c0_i32_1 = arith.constant 0 : i32
    return %c0_i32, %c0_i32_0 : i32, i32
  }
  func.func @transform_8(%arg0: i32) -> (i32, i32) {
    %c0_i32 = arith.constant 0 : i32
    %c0_i32_0 = arith.constant 0 : i32
    %c0_i32_1 = arith.constant 0 : i32
    return %c0_i32, %c0_i32_0 : i32, i32
  }
  func.func @transform_9(%arg0: i32) -> (i32, i32) {
    %c0_i32 = arith.constant 0 : i32
    %c0_i32_0 = arith.constant 0 : i32
    return %arg0, %c0_i32 : i32, i32
  }
}

</mosaic_0001>

<bundles_post_ra>
// kernel: tpu_custom_call.1
= control target key start
LH: loop header
LB: loop body
LE: loop exit
PB: predicated region body
PF: predicated region fallthrough
CT: control target
= control target key end

     0   :  { %14 = vsyncpa [#allocation3], 0  ;;  %s695_s0 = inlined_call_operand.hbm [shape: bf16[16,16], index: 0, kind: input, shape index: {}]   ;;  %s696_s1 = inlined_call_operand.hbm [shape: bf16[16,32], index: 1, kind: input, shape index: {}]   ;;  %s697_s2 = inlined_call_operand.vmem [shape: bf16[16,4], index: 2, kind: input, shape index: {}]   ;;  %s698_s3 = inlined_call_operand.vmem [shape: f32[1,4], index: 3, kind: input, shape index: {}]   ;;  %s699_s4 = inlined_call_operand.vmem [shape: bf16[32,32], index: 4, kind: input, shape index: {}]   ;;  %s700_s5 = inlined_call_operand.vmem [shape: f32[1,32], index: 5, kind: input, shape index: {}]   ;;  %s701_s6 = inlined_call_operand.hbm [shape: bf16[32,128], index: 6, kind: input, shape index: {}]   ;;  %s702_s7 = inlined_call_operand.vmem [shape: f32[1,128], index: 7, kind: input, shape index: {}]   ;;  %s703_s8 = inlined_call_operand.vmem [shape: f32[1,32], index: 8, kind: input, shape index: {}]   ;;  %s704_s9 = inlined_call_operand.hbm [shape: f32[16,32], index: 9, kind: output, shape index: {}]  }
   0x1   :  { %15 = vsyncpa [#allocation6], 0 }
   0x2   :  { %16 = vsyncpa [#allocation4], 0  ;;  %s580_s30 = smov [#allocation5]   ;;  %s581_s11 = smov [#allocation2]  }
   0x3   :  { %s34_s10 = sshll.u32 %s580_s30, 4  ;;  %s22_s12 = sshll.u32 %s581_s11, 4  ;;  %s35_s10 = int_to_ptr.vmem [resolvable:$true] %s34_s10  ;;  %s23_s12 = int_to_ptr.vmem [resolvable:$true] %s22_s12 }
   0x4   :  { %s502_s13 = scalar_lea.vmem %s35_s10, 128  ;;  %p507_p1 = scmp.lt.s32.totalorder %s35_s10, %s35_s10 }
   0x5   :  { %p503_p0 = scmp.ne.s32.totalorder %s35_s10, %s502_s13  ;;  %p508_p2 = scmp.lt.s32.totalorder %s502_s13, %s502_s13 }
   0x7   :  { %p509_p3 = por %p508_p2, %p507_p1 }
   0x9   :  { %p510_p4 = pnand %p509_p3, %p503_p0 }
   0xb   :  { %513 = shalt.err (!%p510_p4)
}
   0xc   :  { %s582_s14 = smov 64   ;;  %s583_s15 = smov 4  }
   0xd   :  { %40 = dma.hbm_to_vmem [thread:$0]  %s696_s1, 128, %s35_s10, [#allocation6], %s582_s14, %s582_s14, %s583_s15  }
   0xe   :  { %s522_s18 = scalar_lea.vmem %s23_s12, 128  ;;  %p527_p6 = scmp.lt.s32.totalorder %s23_s12, %s23_s12 }
   0xf   :  { %p523_p5 = scmp.ne.s32.totalorder %s23_s12, %s522_s18  ;;  %p528_p7 = scmp.lt.s32.totalorder %s522_s18, %s522_s18 }
  0x11   :  { %p529_p8 = por %p528_p7, %p527_p6 }
  0x13   :  { %p530_p9 = pnand %p529_p8, %p523_p5 }
  0x15   :  { %533 = shalt.err (!%p530_p9)
}
  0x16   :  { %28 = dma.hbm_to_vmem [thread:$0]  %s695_s0, 128, %s23_s12, [#allocation3], %s582_s14, %s582_s14, %s583_s15  }
  0x17   :  { %s584_s21 = smov [#allocation7]  }
  0x18   :  { %s54_s22 = sshll.u32 %s584_s21, 4  ;;  %s55_s22 = int_to_ptr.vmem [resolvable:$true] %s54_s22 }
  0x19   :  { %s542_s23 = scalar_lea.vmem %s55_s22, 256  ;;  %p547_p11 = scmp.lt.s32.totalorder %s55_s22, %s55_s22 }
  0x1a   :  { %p543_p10 = scmp.ne.s32.totalorder %s55_s22, %s542_s23  ;;  %p548_p12 = scmp.lt.s32.totalorder %s542_s23, %s542_s23 }
  0x1c   :  { %p549_p13 = por %p548_p12, %p547_p11 }
  0x1e   :  { %p550_p0 = pnand %p549_p13, %p543_p10 }
  0x20   :  { %553 = shalt.err (!%p550_p0)
}
  0x21   :  { %60 = dma.hbm_to_vmem [thread:$0]  %s701_s6, 256, %s55_s22, [#allocation6], %s582_s14, %s582_s14, %s583_s15  }
  0x22   :  { %574 = dma.done.wait [#allocation3], 128  }
  0x23   :  { %575 = vsyncadd [#allocation3], 4294967168 }
  0x24   :  { %576 = dma.done.wait [#allocation6], 384  }
  0x25   :  { %577 = vsyncadd [#allocation6], 4294966912  ;;  %v585_v0 = vmov 0.0   ;;  %vm586_vm0 = vmmov 0   ;;  %v479_v1 = vld [vmem:[%s697_s2] sm:$0xff]   ;;  %vm97_vm1 = vcmask 130048  }
  0x26   :  { %433 = vmatprep.subr.bf16.mxu0 %v585_v0  ;;  %435 = vmatprep.mubr.msk.bf16.mxu0 %vm586_vm0, %v585_v0  ;;  %v480_v2 = vld [vmem:[#allocation2] sm:$0xff]   ;;  %v481_v3 = vld [vmem:[%s699_s4 + $0x8] sm:$0xff]   ;;  %vm195_vm2 = vcmask 261120   ;;  %vm142_vm3 = vcmask 31744   ;;  %v484_v15 = vld [vmem:[#allocation7 + $0x8] sm:$0xff]   ;;  %v587_v37 = vmov 2  }
  0x27   :  { %439 = vmatprep.subr.bf16.mxu1 %v585_v0  ;;  %443 = vmatprep.mubr.msk.bf16.mxu1 %vm586_vm0, %v585_v0  ;;  %v482_v4 = vld [vmem:[%s699_s4] sm:$0xff]   ;;  %v483_v5 = vld [vmem:[#allocation5] sm:$0xff]   ;;  %v485_v16 = vld [vmem:[#allocation7] sm:$0xff]   ;;  %v588_v38 = vmov 1   ;;  %v589_v47 = vmov 3   ;;  %v590_v50 = vmov 0  }
  0x28   :  { %434 = vmatpush3.bf16.msra.mxu0 %v479_v1  ;;  %440 = vmatpush3.bf16.msra.mxu1 %v481_v3  ;;  %v411_v6 = vld [vmem:[%s698_s3] ss:$0 sm:$0xff]  ;;  %s591_s10 = smov 96   ;;  %s592_s11 = smov 32  }
  0x29   :  { %447 = vmatprep.subr.bf16.mxu0 %v585_v0  ;;  %441 = vmatprep.subr.bf16.mxu1 %v585_v0  ;;  %v415_v17 = vld [vmem:[%s700_s5] ss:$0 sm:$0xff]  ;;  %s593_s13 = smov [#allocation8]  }
  0x2a   :  { %472 = vset.pattern.permute.xlu1 %v587_v37  ;;  %471 = vset.pattern.permute.xlu0 %v588_v38  ;;  %v420_v51 = vld [vmem:[%s702_s7] ss:$0 sm:$0xff] }
  0x2b   :  { %436 = vmatmul.mubr.msk.bf16.vlgmr.msra.gmra.mxu0 %vm97_vm1, %v480_v2 }
  0x2c   :  { %451 = vmatprep.mubr.msk.bf16.mxu0 %vm586_vm0, %v585_v0  ;;  %442 = vmatpush3.bf16.msra.mxu1 %v482_v4 }
  0x2d   :  { %448 = vmatpush3.bf16.msra.mxu0 %v484_v15 }
  0x2e   :  { %449 = vmatprep.subr.bf16.mxu0 %v585_v0 }
  0x2f   :  { %444 = vmatmul.mubr.msk.bf16.vlgmr.msra.gmra.mxu1 %vm195_vm2, %v483_v5 }
  0x31   :  { %450 = vmatpush3.bf16.msra.mxu0 %v485_v16 }
  0xeb   :  { %v135_v7 = vpop.f32.mrf.mxu0 }
  0xec   :  { %v136_v8 = vadd.f32 %v411_v6, %v135_v7 }
  0xed   :  { %v437_v9 = vpop.f32.mrf.mxu0 }
  0xee   :  { %v143_v10 = vsel %vm142_vm3, %v136_v8, -inf  ;;  %v424_v9 = vld [vmem:[%s703_s8] ss:$0 sm:$0xff] }
  0xef   :  { %144 = vmax.xlane.f32.xlu0 %v143_v10  ;;  %v138_v11 = vpop.f32.mrf.mxu0  ;;  %v233_v18 = vpop.f32.mrf.mxu1 }
  0xf0   :  { %v139_v12 = vadd.f32 %v411_v6, %v138_v11  ;;  %v234_v19 = vadd.f32 %v415_v17, %v233_v18 }
  0xf1   :  { %v438_v13 = vpop.f32.mrf.mxu0  ;;  %v445_v20 = vpop.f32.mrf.mxu1 }
  0xf2   :  { %v146_v14 = vsel %vm142_vm3, %v139_v12, -inf  ;;  %v240_v22 = vmax.f32 %v234_v19, 0.0 }
  0xf3   :  { %147 = vmax.xlane.f32.xlu0 %v146_v14  ;;  %v236_v21 = vpop.f32.mrf.mxu1 }
  0xf4   :  { %v237_v23 = vadd.f32 %v415_v17, %v236_v21 }
  0xf5   :  { %v446_v24 = vpop.f32.mrf.mxu1 }
  0xf6   :  { %v241_v25 = vmax.f32 %v237_v23, 0.0 }
  0xf8   :  { %v242_v26 = vpack.c.bf16 %v241_v25, %v240_v22 }
  0xfa   :  { %452 = vmatmul.mubr.msk.bf16.vlgmr.msra.gmra.mxu0 %vm195_vm2, %v242_v26 }
 0x178   :  { %v145_v27 = vpop.xlane.xlu0 %144 }
 0x179   :  { %v149_v28 = vsub.f32 %v136_v8, %v145_v27 }
 0x17b   :  { %v151_v29 = vmul.f32 1.442695, %v149_v28 }
 0x17c   :  { %v148_v30 = vpop.xlane.xlu0 %147 }
 0x17d   :  { %486 = vpow2.f32 %v151_v29  ;;  %v150_v31 = vsub.f32 %v139_v12, %v148_v30 }
 0x17f   :  { %v153_v32 = vmul.f32 1.442695, %v150_v31 }
 0x181   :  { %488 = vpow2.f32 %v153_v32 }
 0x18a   :  { %v487_v33 = vpop.eup %486 }
 0x18b   :  { %v155_v34 = vsel %vm142_vm3, %v487_v33, 0.0 }
 0x18c   :  { %156 = vadd.xlane.f32.xlu1 %v155_v34 }
 0x18e   :  { %v489_v35 = vpop.eup %488 }
 0x18f   :  { %v158_v36 = vsel %vm142_vm3, %v489_v35, 0.0 }
 0x190   :  { %159 = vadd.xlane.f32.xlu1 %v158_v36 }
 0x1ba   :  { %v303_v39 = vpop.f32.mrf.mxu0 }
 0x1bb   :  { %v304_v52 = vadd.f32 %v420_v51, %v303_v39 }
 0x1bc   :  { %v453_v40 = vpop.f32.mrf.mxu0 }
 0x1be   :  { %v306_v43 = vpop.f32.mrf.mxu0 }
 0x1bf   :  { %v307_v58 = vadd.f32 %v420_v51, %v306_v43 }
 0x1c0   :  { %v454_v45 = vpop.f32.mrf.mxu0 }
 0x215   :  { %v157_v41 = vpop.xlane.xlu1 %156 }
 0x216   :  { %490 = vrcp.f32 %v157_v41 }
 0x219   :  { %v160_v42 = vpop.xlane.xlu1 %159 }
 0x21a   :  { %492 = vrcp.f32 %v160_v42 }
 0x223   :  { %v491_v44 = vpop.eup %490 }
 0x224   :  { %v163_v46 = vmul.f32 %v491_v44, %v487_v33 }
 0x226   :  { %323 = vperm.xlu0 %471, %v163_v46   ;;  %343 = vperm.xlu1 %472, %v163_v46  }
 0x227   :  { %v493_v48 = vpop.eup %492 }
 0x228   :  { %v164_v49 = vmul.f32 %v493_v48, %v489_v35 }
 0x22a   :  { %473 = vset.pattern.permute.xlu1 %v589_v47  ;;  %478 = vset.pattern.permute.xlu0 %v589_v47 }
 0x22b   :  { %363 = vperm.xlu1 %473, %v163_v46  }
 0x22f   :  { %474 = vset.pattern.permute.xlu1 %v588_v38 }
 0x230   :  { %327 = vperm.xlu1 %474, %v164_v49  }
 0x234   :  { %475 = vset.pattern.permute.xlu1 %v587_v37 }
 0x235   :  { %347 = vperm.xlu1 %475, %v164_v49  }
 0x239   :  { %476 = vset.pattern.permute.xlu1 %v589_v47 }
 0x23a   :  { %367 = vperm.xlu1 %476, %v164_v49  }
 0x23e   :  { %477 = vset.pattern.permute.xlu1 %v590_v50 }
 0x23f   :  { %312 = vperm.xlu1 %477, %v163_v46  }
 0x243   :  { %317 = vperm.xlu1 %477, %v164_v49  }
 0x2a1   :  { %v344_v53 = vpop.permute.xlu1 %343  ;;  %v324_v54 = vpop.permute.xlu0 %323 }
 0x2a2   :  { %v330_v55 = vmul.f32 %v324_v54, %v304_v52  ;;  %v350_v56 = vmul.f32 %v344_v53, %v304_v52 }
 0x2a4   :  { %334 = vrot.lane.b32.xlu1 %v330_v55, %s591_s10 }
 0x2a6   :  { %v364_v57 = vpop.permute.xlu1 %363 }
 0x2a7   :  { %v370_v59 = vmul.f32 %v364_v57, %v304_v52 }
 0x2a8   :  { %354 = vrot.lane.b32.xlu1 %v350_v56, %s582_s14 }
 0x2ab   :  { %v328_v60 = vpop.permute.xlu1 %327 }
 0x2ac   :  { %v331_v61 = vmul.f32 %v328_v60, %v307_v58  ;;  %374 = vrot.lane.b32.xlu1 %v370_v59, %s592_s11 }
 0x2ae   :  { %336 = vrot.lane.b32.xlu0 %v331_v61, %s591_s10 }
 0x2b0   :  { %v348_v62 = vpop.permute.xlu1 %347 }
 0x2b1   :  { %v351_v63 = vmul.f32 %v348_v62, %v307_v58 }
 0x2b3   :  { %356 = vrot.lane.b32.xlu0 %v351_v63, %s582_s14  ;;  %s398_s14 = sshll.u32 %s593_s13, 4  ;;  %s399_s14 = int_to_ptr.vmem [resolvable:$true] %s398_s14 }
 0x2b4   :  { %s554_s15 = scalar_lea.vmem %s399_s14, 256  ;;  %p559_p2 = scmp.lt.s32.totalorder %s399_s14, %s399_s14 }
 0x2b5   :  { %v368_v0 = vpop.permute.xlu1 %367  ;;  %p555_p1 = scmp.ne.s32.totalorder %s399_s14, %s554_s15  ;;  %p560_p3 = scmp.lt.s32.totalorder %s554_s15, %s554_s15 }
 0x2b6   :  { %v371_v1 = vmul.f32 %v368_v0, %v307_v58 }
 0x2b7   :  { %p561_p4 = por %p560_p3, %p559_p2 }
 0x2b8   :  { %376 = vrot.lane.b32.xlu0 %v371_v1, %s592_s11 }
 0x2b9   :  { %p562_p5 = pnand %p561_p4, %p555_p1 }
 0x2ba   :  { %v313_v2 = vpop.permute.xlu1 %312 }
 0x2bb   :  { %v320_v5 = vmul.f32 %v313_v2, %v304_v52 }
 0x2be   :  { %v318_v3 = vpop.permute.xlu1 %317 }
 0x2bf   :  { %v321_v14 = vmul.f32 %v318_v3, %v307_v58 }
 0x316   :  { %v335_v4 = vpop.permute.xlu1 %334 }
 0x317   :  { %v340_v7 = vadd.f32 %v335_v4, %v320_v5 }
 0x31a   :  { %v355_v6 = vpop.permute.xlu1 %354 }
 0x31b   :  { %v360_v8 = vadd.f32 %v355_v6, %v340_v7 }
 0x31e   :  { %v375_v10 = vpop.permute.xlu1 %374 }
 0x31f   :  { %v380_v11 = vadd.f32 %v375_v10, %v360_v8 }
 0x320   :  { %v337_v12 = vpop.permute.xlu0 %336 }
 0x321   :  { %v389_v13 = vadd.f32 %v424_v9, %v380_v11  ;;  %v341_v16 = vadd.f32 %v337_v12, %v321_v14 }
 0x323   :  { %391 = vst.msk [vmem:[#allocation8] sm:$0xff] %vm195_vm2, %v389_v13 }
 0x325   :  { %v357_v15 = vpop.permute.xlu0 %356 }
 0x326   :  { %v361_v17 = vadd.f32 %v357_v15, %v341_v16 }
 0x32a   :  { %v377_v18 = vpop.permute.xlu0 %376 }
 0x32b   :  { %v381_v19 = vadd.f32 %v377_v18, %v361_v17 }
 0x32d   :  { %v390_v20 = vadd.f32 %v424_v9, %v381_v19 }
 0x32f   :  { %392 = vst.msk [vmem:[#allocation8 + $0x8] sm:$0xff] %vm195_vm2, %v390_v20 }
 0x330   :  { %565 = shalt.err (!%p562_p5)
}
 0x331   :  { %s594_s8 = smov 128   ;;  %s595_s16 = smov 8  }
 0x332   :  { %404 = dma.vmem_to_hbm [thread:$0]  %s399_s14, 256, %s704_s9, [#allocation4], %s594_s8, %s594_s8, %s595_s16  }
 0x333   :  { %578 = dma.done.wait [#allocation4], 256  }
 0x334   :  { %579 = vsyncadd [#allocation4], 4294967040 }
 0x335   :  { %408 = vsyncpa [#allocation3], 1 }
 0x336   :  { %409 = vsyncpa [#allocation6], 1 }
 0x337   :  { %410 = vsyncpa [#allocation4], 1 }

</bundles_post_ra>
